<compile_context>
chip_gen: v5e
topology: v5e:2x2
jax: 0.10.0
libtpu: 0.0.40
codegen_flags: <defaults>
</compile_context>

<pallas_src>
import functools

import jax
import jax.numpy as jnp
from jax.experimental import pallas as pl
from jax.experimental.pallas import tpu as pltpu


def _round_up(v, m):
    return (v + m - 1) // m * m


def _gottlieb_kan_kernel(alpha_ref, x_ref, coeffs_ref, gamma_ref, beta_ref,
                         o_ref, *, degree, use_layernorm, out_dim, mxu_dtype):
    # alpha: SMEM (1,) ; x: (TILE_B, I) ; coeffs: (K, O_pad) in mxu_dtype
    # gamma/beta: (1, O_pad) ; o: (TILE_B, O_pad)
    x = jax.nn.sigmoid(x_ref[...].astype(jnp.float32))
    alpha = alpha_ref[0]                       # scalar (sreg)

    # Gottlieb recurrence (VPU, f32):
    #   G0 = 1 ; G1 = 2*alpha*x
    #   Gn = 2*(alpha+n-1)*x*G_{n-1} - (alpha+2n-2)*G_{n-2}
    gs = [jnp.ones_like(x)]
    if degree >= 1:
        gs.append((2.0 * alpha) * x)
        for n in range(2, degree + 1):
            a_n = 2.0 * (alpha + (n - 1))      # scalar math, hoisted per degree
            b_n = alpha + (2 * n - 2)
            gs.append(a_n * x * gs[-1] - b_n * gs[-2])

    # Stack the basis along the contraction (lane) axis: (TILE_B, (deg+1)*I).
    basis = jnp.concatenate(gs, axis=-1) if len(gs) > 1 else gs[0]

    # One fused MXU matmul with K = (degree+1)*I, f32 accumulation.
    y = jnp.dot(basis.astype(mxu_dtype), coeffs_ref[...],
                preferred_element_type=jnp.float32)        # (TILE_B, O_pad)

    if use_layernorm:
        o_pad = y.shape[-1]
        inv_n = 1.0 / out_dim
        # Padded coeff columns are zero -> padded y columns are exactly zero,
        # so the plain sum already equals the sum over the true O columns.
        mean = jnp.sum(y, axis=-1, keepdims=True) * inv_n
        diff = y - mean
        if o_pad != out_dim:
            col = jax.lax.broadcasted_iota(jnp.int32, y.shape, 1)
            diff_m = jnp.where(col < out_dim, diff, 0.0)
        else:
            diff_m = diff
        var = jnp.sum(diff_m * diff_m, axis=-1, keepdims=True) * inv_n  # biased
        # Padded gamma/beta are zero -> padded output columns are zero.
        y = diff * jax.lax.rsqrt(var + 1e-5) * gamma_ref[...] + beta_ref[...]

    o_ref[...] = y.astype(o_ref.dtype)


def gottlieb_kan_layer(x, alpha, coeffs, ln_weight, ln_bias, *,
                       degree, use_layernorm,
                       mxu_dtype=jnp.float32, tile_b=512):
    """x: (B, input_dim); coeffs: (input_dim, output_dim, degree+1)."""
    B, I = x.shape
    O = coeffs.shape[1]
    K = (degree + 1) * I

    O_pad = _round_up(O, 128)                     # lane-dense output stores
    TILE_B = min(_round_up(B, 8), tile_b)         # sublane-aligned batch tile
    B_pad = _round_up(B, TILE_B)
    grid_b = B_pad // TILE_B

    # (I, O, D+1) -> (D+1, I, O) -> ((D+1)*I, O): row n*I + i == coeffs[i, :, n],
    # matching the concatenation order of the basis inside the kernel.
    coeffs_2d = jnp.transpose(coeffs, (2, 0, 1)).reshape(K, O)
    coeffs_2d = jnp.pad(coeffs_2d.astype(jnp.float32),
                        ((0, 0), (0, O_pad - O))).astype(mxu_dtype)

    gamma = jnp.pad(jnp.reshape(ln_weight, (1, O)).astype(jnp.float32),
                    ((0, 0), (0, O_pad - O)))
    beta = jnp.pad(jnp.reshape(ln_bias, (1, O)).astype(jnp.float32),
                   ((0, 0), (0, O_pad - O)))
    alpha_s = jnp.reshape(alpha, (1,)).astype(jnp.float32)

    # Keep x in its original dtype; cast to f32 inside the kernel.
    x_p = jnp.pad(x, ((0, B_pad - B), (0, 0)))

    # VMEM budget (advisory): resident coeffs (+double buffer), double-buffered
    # x / out tiles, gamma/beta, basis slab, margin. Clamp for v7x (64 MiB VMEM).
    itemsize = jnp.dtype(mxu_dtype).itemsize
    est = (2 * K * O_pad * itemsize
           + 4 * TILE_B * I * jnp.dtype(x_p.dtype).itemsize
           + 4 * TILE_B * O_pad * 4
           + TILE_B * K * 4
           + 8 * O_pad * 4
           + (2 << 20))
    vmem_limit = int(min(max(est, 32 << 20), 60 << 20))

    kernel = functools.partial(
        _gottlieb_kan_kernel, degree=degree, use_layernorm=use_layernorm,
        out_dim=O, mxu_dtype=mxu_dtype)

    out = pl.pallas_call(
        kernel,
        out_shape=jax.ShapeDtypeStruct((B_pad, O_pad), jnp.float32),
        grid=(grid_b,),
        in_specs=[
            pl.BlockSpec(memory_space=pltpu.MemorySpace.SMEM),   # alpha (scalar)
            pl.BlockSpec((TILE_B, I), lambda i: (i, 0)),         # x, batch-tiled
            pl.BlockSpec((K, O_pad), lambda i: (0, 0)),          # coeffs, resident
            pl.BlockSpec((1, O_pad), lambda i: (0, 0)),          # gamma, resident
            pl.BlockSpec((1, O_pad), lambda i: (0, 0)),          # beta, resident
        ],
        out_specs=pl.BlockSpec((TILE_B, O_pad), lambda i: (i, 0)),
        compiler_params=pltpu.CompilerParams(
            dimension_semantics=("parallel",),
            vmem_limit_bytes=vmem_limit),
    )(alpha_s, x_p, coeffs_2d, gamma, beta)

    return out[:B, :O]


# ---------------- pure-JAX reference (mirrors the PyTorch module) -----------
def _gottlieb_ref(n, x, alpha):
    if n == 0:
        return jnp.ones_like(x)
    elif n == 1:
        return 2 * alpha * x
    else:
        return (2 * (alpha + n - 1) * x * _gottlieb_ref(n - 1, x, alpha)
                - (alpha + 2 * n - 2) * _gottlieb_ref(n - 2, x, alpha))


def gottlieb_kan_ref(x, alpha, coeffs, ln_weight, ln_bias, *,
                     degree, use_layernorm):
    xs = jax.nn.sigmoid(x)
    basis = jnp.stack([_gottlieb_ref(n, xs, alpha[0])
                       for n in range(degree + 1)], axis=-1)   # (B, I, D+1)
    y = jnp.einsum('bid,iod->bo', basis, coeffs)
    if use_layernorm:
        mean = jnp.mean(y, axis=-1, keepdims=True)
        var = jnp.mean((y - mean) ** 2, axis=-1, keepdims=True)
        y = (y - mean) / jnp.sqrt(var + 1e-5)
        y = y * ln_weight + ln_bias
    return y


if __name__ == "__main__":
    # Small shapes consistent with the module's forward: x is (batch, input_dim).
    batch, input_dim, output_dim, degree = 8, 16, 32, 3
    use_layernorm = True

    key = jax.random.PRNGKey(0)
    k_x, k_alpha, k_coeff = jax.random.split(key, 3)

    x = jax.random.normal(k_x, (batch, input_dim), dtype=jnp.float32)
    # Deterministic parameter init mirroring __init__:
    alpha = jax.random.normal(k_alpha, (1,), dtype=jnp.float32)          # randn(1)
    coeffs = (jax.random.normal(k_coeff,
                                (input_dim, output_dim, degree + 1),
                                dtype=jnp.float32)
              * (1.0 / (input_dim * (degree + 1))))                      # N(0, std)
    ln_weight = jnp.ones((output_dim,), dtype=jnp.float32)               # LayerNorm default
    ln_bias = jnp.zeros((output_dim,), dtype=jnp.float32)

    ref = gottlieb_kan_ref(x, alpha, coeffs, ln_weight, ln_bias,
                           degree=degree, use_layernorm=use_layernorm)

    # f32 MXU path (bit-accurate check against the reference).
    out = gottlieb_kan_layer(x, alpha, coeffs, ln_weight, ln_bias,
                             degree=degree, use_layernorm=use_layernorm,
                             mxu_dtype=jnp.float32)
    out = jax.block_until_ready(out)
    assert out.shape == (batch, output_dim)
    assert jnp.allclose(out, ref, atol=1e-3, rtol=1e-3), (
        f"f32 max abs err {jnp.max(jnp.abs(out - ref))}")

    # bf16 MXU path (throughput / VMEM option) with looser tolerance.
    out_bf16 = gottlieb_kan_layer(x, alpha, coeffs, ln_weight, ln_bias,
                                  degree=degree, use_layernorm=use_layernorm,
                                  mxu_dtype=jnp.bfloat16)
    out_bf16 = jax.block_until_ready(out_bf16)
    assert out_bf16.shape == (batch, output_dim)
    assert jnp.allclose(out_bf16, ref, atol=5e-2, rtol=5e-2), (
        f"bf16 max abs err {jnp.max(jnp.abs(out_bf16 - ref))}")

    print("KERNEL_OK")
</pallas_src>

<mosaic_0001>
module attributes {stable_mosaic.version = 11 : i64} {
  func.func @_gottlieb_kan_kernel(%arg0: i32, %arg1: memref<1xf32, #tpu.memory_space<smem>>, %arg2: memref<8x16xf32, #tpu.memory_space<vmem>>, %arg3: memref<64x128xf32, #tpu.memory_space<vmem>>, %arg4: memref<1x128xf32, #tpu.memory_space<vmem>>, %arg5: memref<1x128xf32, #tpu.memory_space<vmem>>, %arg6: memref<8x128xf32, #tpu.memory_space<vmem>>) attributes {dimension_semantics = [#tpu.dimension_semantics<parallel>], iteration_bounds = array<i64: 1>, scalar_prefetch = 0 : i64, scratch_operands = 0 : i64, tpu.core_type = #tpu.core_type<tc>, window_params = [{transform_indices = @transform_0, window_bounds = array<i64: 1>}, {transform_indices = @transform_1, window_bounds = array<i64: 8, 16>}, {pipeline_mode = #tpu.pipeline_mode<synchronous>, transform_indices = @transform_2, window_bounds = array<i64: 64, 128>}, {pipeline_mode = #tpu.pipeline_mode<synchronous>, transform_indices = @transform_3, window_bounds = array<i64: 1, 128>}, {pipeline_mode = #tpu.pipeline_mode<synchronous>, transform_indices = @transform_4, window_bounds = array<i64: 1, 128>}, {transform_indices = @transform_5, window_bounds = array<i64: 8, 128>}]} {
    %c0 = arith.constant 0 : index
    %c0_0 = arith.constant 0 : index
    %0 = vector.load %arg2[%c0, %c0_0] : memref<8x16xf32, #tpu.memory_space<vmem>>, vector<8x16xf32>
    %1 = arith.negf %0 : vector<8x16xf32>
    %2 = math.exp %1 : vector<8x16xf32>
    %cst = arith.constant 1.000000e+00 : f32
    %3 = vector.broadcast %cst : f32 to vector<8x16xf32>
    %4 = arith.addf %3, %2 : vector<8x16xf32>
    %5 = arith.divf %3, %4 : vector<8x16xf32>
    %c0_1 = arith.constant 0 : index
    %6 = memref.load %arg1[%c0_1] : memref<1xf32, #tpu.memory_space<smem>>
    %cst_2 = arith.constant 1.000000e+00 : f32
    %7 = vector.broadcast %cst_2 : f32 to vector<8x16xf32>
    %cst_3 = arith.constant 2.000000e+00 : f32
    %8 = arith.mulf %cst_3, %6 : f32
    %9 = vector.broadcast %8 : f32 to vector<8x16xf32>
    %10 = arith.mulf %9, %5 : vector<8x16xf32>
    %cst_4 = arith.constant 1.000000e+00 : f32
    %11 = arith.addf %6, %cst_4 : f32
    %cst_5 = arith.constant 2.000000e+00 : f32
    %12 = arith.mulf %cst_5, %11 : f32
    %cst_6 = arith.constant 2.000000e+00 : f32
    %13 = arith.addf %6, %cst_6 : f32
    %14 = vector.broadcast %12 : f32 to vector<8x16xf32>
    %15 = arith.mulf %14, %5 : vector<8x16xf32>
    %16 = arith.mulf %15, %10 : vector<8x16xf32>
    %17 = vector.broadcast %13 : f32 to vector<8x16xf32>
    %18 = arith.mulf %17, %7 : vector<8x16xf32>
    %19 = arith.subf %16, %18 : vector<8x16xf32>
    %cst_7 = arith.constant 2.000000e+00 : f32
    %20 = arith.addf %6, %cst_7 : f32
    %cst_8 = arith.constant 2.000000e+00 : f32
    %21 = arith.mulf %cst_8, %20 : f32
    %cst_9 = arith.constant 4.000000e+00 : f32
    %22 = arith.addf %6, %cst_9 : f32
    %23 = vector.broadcast %21 : f32 to vector<8x16xf32>
    %24 = arith.mulf %23, %5 : vector<8x16xf32>
    %25 = arith.mulf %24, %19 : vector<8x16xf32>
    %26 = vector.broadcast %22 : f32 to vector<8x16xf32>
    %27 = arith.mulf %26, %10 : vector<8x16xf32>
    %28 = arith.subf %25, %27 : vector<8x16xf32>
    %29 = tpu.concatenate %7, %10, %19, %28 in 1 : vector<8x16xf32>, vector<8x16xf32>, vector<8x16xf32>, vector<8x16xf32> -> vector<8x64xf32>
    %c0_10 = arith.constant 0 : index
    %c0_11 = arith.constant 0 : index
    %30 = vector.load %arg3[%c0_10, %c0_11] : memref<64x128xf32, #tpu.memory_space<vmem>>, vector<64x128xf32>
    %cst_12 = arith.constant dense<0.000000e+00> : vector<8x128xf32>
    %31 = tpu.matmul %29, %30, %cst_12 {dimension_numbers = #tpu.dot_dimension_numbers<[1], [0], [0], [1], [0, 0, 1, 1], [], []>} : vector<8x64xf32>, vector<64x128xf32>, vector<8x128xf32> -> vector<8x128xf32>
    %cst_13 = arith.constant dense<0.000000e+00> : vector<8xf32>
    %32 = vector.multi_reduction <add>, %31, %cst_13 [1] : vector<8x128xf32> to vector<8xf32>
    %33 = vector.shape_cast %32 : vector<8xf32> to vector<8x1xf32>
    %cst_14 = arith.constant 3.125000e-02 : f32
    %34 = vector.broadcast %cst_14 : f32 to vector<8x1xf32>
    %35 = arith.mulf %33, %34 : vector<8x1xf32>
    %36 = vector.broadcast %35 : vector<8x1xf32> to vector<8x128xf32>
    %37 = arith.subf %31, %36 : vector<8x128xf32>
    %38 = tpu.iota {dimensions = array<i32: 1>} : vector<8x128xi32>
    %c32_i32 = arith.constant 32 : i32
    %39 = vector.broadcast %c32_i32 : i32 to vector<8x128xi32>
    %40 = arith.cmpi slt, %38, %39 : vector<8x128xi32>
    %cst_15 = arith.constant 0.000000e+00 : f32
    %41 = vector.broadcast %cst_15 : f32 to vector<8x128xf32>
    %42 = arith.select %40, %37, %41 : vector<8x128xi1>, vector<8x128xf32>
    %43 = arith.mulf %42, %42 : vector<8x128xf32>
    %cst_16 = arith.constant dense<0.000000e+00> : vector<8xf32>
    %44 = vector.multi_reduction <add>, %43, %cst_16 [1] : vector<8x128xf32> to vector<8xf32>
    %45 = vector.shape_cast %44 : vector<8xf32> to vector<8x1xf32>
    %cst_17 = arith.constant 3.125000e-02 : f32
    %46 = vector.broadcast %cst_17 : f32 to vector<8x1xf32>
    %47 = arith.mulf %45, %46 : vector<8x1xf32>
    %cst_18 = arith.constant 9.99999974E-6 : f32
    %48 = vector.broadcast %cst_18 : f32 to vector<8x1xf32>
    %49 = arith.addf %47, %48 : vector<8x1xf32>
    %50 = math.rsqrt %49 : vector<8x1xf32>
    %51 = vector.broadcast %50 : vector<8x1xf32> to vector<8x128xf32>
    %52 = arith.mulf %37, %51 : vector<8x128xf32>
    %c0_19 = arith.constant 0 : index
    %c0_20 = arith.constant 0 : index
    %53 = vector.load %arg4[%c0_19, %c0_20] : memref<1x128xf32, #tpu.memory_space<vmem>>, vector<1x128xf32>
    %54 = vector.broadcast %53 : vector<1x128xf32> to vector<8x128xf32>
    %55 = arith.mulf %52, %54 : vector<8x128xf32>
    %c0_21 = arith.constant 0 : index
    %c0_22 = arith.constant 0 : index
    %56 = vector.load %arg5[%c0_21, %c0_22] : memref<1x128xf32, #tpu.memory_space<vmem>>, vector<1x128xf32>
    %57 = vector.broadcast %56 : vector<1x128xf32> to vector<8x128xf32>
    %58 = arith.addf %55, %57 : vector<8x128xf32>
    %c0_23 = arith.constant 0 : index
    %c0_24 = arith.constant 0 : index
    %59 = vector.load %arg6[%c0_23, %c0_24] : memref<8x128xf32, #tpu.memory_space<vmem>>, vector<8x128xf32>
    tpu.vector_store %arg6[%c0_23, %c0_24], %58 {strides = array<i32>} : memref<8x128xf32, #tpu.memory_space<vmem>>, vector<8x128xf32>,
    return
  }
  func.func @transform_0(%arg0: i32) -> i32 {
    %c0_i32 = arith.constant 0 : i32
    %c0_i32_0 = arith.constant 0 : i32
    return %c0_i32 : i32
  }
  func.func @transform_1(%arg0: i32) -> (i32, i32) {
    %c0_i32 = arith.constant 0 : i32
    %c0_i32_0 = arith.constant 0 : i32
    return %arg0, %c0_i32 : i32, i32
  }
  func.func @transform_2(%arg0: i32) -> (i32, i32) {
    %c0_i32 = arith.constant 0 : i32
    %c0_i32_0 = arith.constant 0 : i32
    %c0_i32_1 = arith.constant 0 : i32
    return %c0_i32, %c0_i32_0 : i32, i32
  }
  func.func @transform_3(%arg0: i32) -> (i32, i32) {
    %c0_i32 = arith.constant 0 : i32
    %c0_i32_0 = arith.constant 0 : i32
    %c0_i32_1 = arith.constant 0 : i32
    return %c0_i32, %c0_i32_0 : i32, i32
  }
  func.func @transform_4(%arg0: i32) -> (i32, i32) {
    %c0_i32 = arith.constant 0 : i32
    %c0_i32_0 = arith.constant 0 : i32
    %c0_i32_1 = arith.constant 0 : i32
    return %c0_i32, %c0_i32_0 : i32, i32
  }
  func.func @transform_5(%arg0: i32) -> (i32, i32) {
    %c0_i32 = arith.constant 0 : i32
    %c0_i32_0 = arith.constant 0 : i32
    return %arg0, %c0_i32 : i32, i32
  }
}

</mosaic_0001>

<bundles_post_ra>
// kernel: tpu_custom_call.1
= control target key start
LH: loop header
LB: loop body
LE: loop exit
PB: predicated region body
PF: predicated region fallthrough
CT: control target
= control target key end

     0   :  { %11 = vsyncpa [#allocation4], 0  ;;  %s356_s0 = inlined_call_operand.<no memory space> [shape: f32[1], index: 0, kind: input, shape index: {}]   ;;  %s357_s1 = inlined_call_operand.hbm [shape: f32[8,16], index: 1, kind: input, shape index: {}]   ;;  %s358_s2 = inlined_call_operand.hbm [shape: f32[64,128], index: 2, kind: input, shape index: {}]   ;;  %s359_s3 = inlined_call_operand.vmem [shape: f32[1,128], index: 3, kind: input, shape index: {}]   ;;  %s360_s4 = inlined_call_operand.vmem [shape: f32[1,128], index: 4, kind: input, shape index: {}]   ;;  %s361_s5 = inlined_call_operand.hbm [shape: f32[8,128], index: 5, kind: output, shape index: {}]  }
   0x1   :  { %12 = vsyncpa [#allocation7], 0 }
   0x2   :  { %13 = vsyncpa [#allocation5], 0  ;;  %s21_s20 = sshll.u32 %s357_s1, 4  ;;  %s291_s21 = smov [#allocation3]   ;;  %s22_s20 = int_to_ptr.hbm [resolvable:$true] %s21_s20 }
   0x3   :  { %s23_s22 = sshll.u32 %s291_s21, 4  ;;  %s31_s25 = sshll.u32 %s358_s2, 4  ;;  %s24_s22 = int_to_ptr.vmem [resolvable:$true] %s23_s22  ;;  %s32_s25 = int_to_ptr.hbm [resolvable:$true] %s31_s25 }
   0x4   :  { %26 = dma.hbm_to_vmem [thread:$0]  %s22_s20, 128, %s24_s22, [#allocation4]  }
   0x5   :  { %s292_s26 = smov [#allocation6]   ;;  %s293_s28 = smov 128  }
   0x6   :  { %s33_s27 = sshll.u32 %s292_s26, 4  ;;  %s294_s29 = smov 8   ;;  %s34_s27 = int_to_ptr.vmem [resolvable:$true] %s33_s27 }
   0x7   :  { %39 = dma.hbm_to_vmem [thread:$0]  %s32_s25, 1024, %s34_s27, [#allocation7], %s293_s28, %s293_s28, %s294_s29  }
   0x8   :  { %285 = dma.done.wait [#allocation4], 128  }
   0x9   :  { %286 = vsyncadd [#allocation4], 4294967168 }
   0xa   :  { %287 = dma.done.wait [#allocation7], 1024  }
   0xb   :  { %288 = vsyncadd [#allocation7], 4294966272  ;;  %v52_v0 = vld [vmem:[#allocation3] sm:$0xff]  ;;  %v116_v3 = vld [vmem:[#allocation6 + $0x30] sm:$0xff]  ;;  %s76_s30 = sadd.f32 1.0, %s356_s0  ;;  %s73_s11 = smul.f32 2.0, %s356_s0  ;;  %v146_v42 = vlaneseq }
   0xc   :  { %v195_v1 = vmul.f32 -1.442695, %v52_v0  ;;  %v117_v2 = vld [vmem:[#allocation6 + $0x38] sm:$0xff]  ;;  %v115_v5 = vld [vmem:[#allocation6 + $0x28] sm:$0xff]  ;;  %s78_s8 = sadd.f32 2.0, %s356_s0  ;;  %s295_s17 = smov 16  }
   0xd   :  { %130 = vmatpush.msra.mxu0 %v117_v2  ;;  %s77_s12 = smul.f32 2.0, %s76_s30  ;;  %v74_v15 = vstv %s73_s11  ;;  %s85_s16 = sadd.f32 4.0, %s356_s0  ;;  %v114_v30 = vld [vmem:[#allocation6 + $0x20] sm:$0xff]  ;;  %v113_v31 = vld [vmem:[#allocation6 + $0x18] sm:$0xff]  ;;  %v112_v32 = vld [vmem:[#allocation6 + $0x10] sm:$0xff]  ;;  %vm104_vm4 = vcmask 130048  }
   0xe   :  { %207 = vpow2.f32 %v195_v1  ;;  %s84_s13 = smul.f32 2.0, %s78_s8  ;;  %v82_v22 = vstv %s78_s8  ;;  %s296_s18 = smov 32   ;;  %v111_v33 = vld [vmem:[#allocation6 + $0x8] sm:$0xff]  ;;  %v110_v34 = vld [vmem:[#allocation6] sm:$0xff]  ;;  %vm106_vm5 = vcmask 261120   ;;  %vm108_vm6 = vcmask 392192  }
   0xf   :  { %131 = vmatpush.msra.mxu0 %v116_v3  ;;  %v79_v16 = vstv %s77_s12  ;;  %v89_v23 = vstv %s85_s16  ;;  %s297_s19 = smov 48   ;;  %vm118_vm7 = vcmask 523264   ;;  %v147_v43 = vand.u32 127, %v146_v42  ;;  %v205_v58 = vld [vmem:[%s359_s3] ss:$0 sm:$0xff]  ;;  %s298_s23 = smov [#allocation8]  }
  0x10   :  { %v86_v19 = vstv %s84_s13  ;;  %v206_v61 = vld [vmem:[%s360_s4] ss:$0 sm:$0xff]  ;;  %s182_s24 = sshll.u32 %s298_s23, 4  ;;  %s184_s27 = sshll.u32 %s361_s5, 4  ;;  %s183_s24 = int_to_ptr.vmem [resolvable:$true] %s182_s24  ;;  %s185_s27 = int_to_ptr.hbm [resolvable:$true] %s184_s27 }
  0x11   :  { %132 = vmatpush.msra.mxu0 %v115_v5  ;;  %vm148_vm8 = vcmp.lt.s32.totalorder %v147_v43, 32 }
  0x13   :  { %133 = vmatpush.msra.mxu0 %v114_v30 }
  0x14   :  { %v208_v4 = vpop.eup %207 }
  0x15   :  { %v56_v6 = vadd.f32 1.0, %v208_v4  ;;  %134 = vmatpush.msra.mxu0 %v113_v31 }
  0x17   :  { %209 = vrcp.f32 %v56_v6  ;;  %v68_v9 = vand.u32 2147483648, %v56_v6  ;;  %vm62_vm0 = vweird.f32 %v56_v6  ;;  %v66_v11 = vand.u32 2147483647, %v56_v6  ;;  %135 = vmatpush.msra.mxu0 %v112_v32 }
  0x19   :  { %v69_v13 = vor.u32 1.1754944e-38, %v68_v9  ;;  %vm67_vm3 = vcmp.eq.f32.partialorder %v66_v11, 8.507059e+37  ;;  %136 = vmatpush.msra.mxu0 %v111_v33 }
  0x1b   :  { %137 = vmatpush.msra.mxu0 %v110_v34 }
  0x1d   :  { %v210_v7 = vpop.eup %209 }
  0x1e   :  { %v58_v8 = vmul.f32 %v210_v7, %v56_v6  ;;  %vm63_vm1 = vweird.f32 %v210_v7 }
  0x1f   :  { %vm64_vm2 = vmor %vm62_vm0, %vm63_vm1 }
  0x20   :  { %v59_v10 = vsub.f32 1.0, %v58_v8 }
  0x22   :  { %v60_v12 = vmul.f32 %v210_v7, %v59_v10 }
  0x24   :  { %v61_v14 = vadd.f32 %v210_v7, %v60_v12 }
  0x26   :  { %v65_v17 = vsel %vm64_vm2, %v210_v7, %v61_v14 }
  0x27   :  { %v70_v18 = vsel %vm67_vm3, %v69_v13, %v65_v17 }
  0x28   :  { %v75_v20 = vmul.f32 %v74_v15, %v70_v18  ;;  %v80_v21 = vmul.f32 %v79_v16, %v70_v18  ;;  %v87_v25 = vmul.f32 %v86_v19, %v70_v18 }
  0x2a   :  { %93 = vrot.lane.b32.xlu0 %v75_v20, %s295_s17  ;;  %v81_v24 = vmul.f32 %v80_v21, %v75_v20  ;;  %v90_v27 = vmul.f32 %v89_v23, %v75_v20 }
  0x2c   :  { %v83_v26 = vsub.f32 %v81_v24, %v82_v22 }
  0x2e   :  { %v88_v28 = vmul.f32 %v87_v25, %v83_v26 }
  0x30   :  { %v91_v29 = vsub.f32 %v88_v28, %v90_v27 }
  0x32   :  { %97 = vrot.lane.b32.xlu0 %v83_v26, %s296_s18  ;;  %101 = vrot.lane.b32.xlu1 %v91_v29, %s297_s19 }
  0x9c   :  { %v94_v35 = vpop.permute.xlu0 %93 }
  0x9d   :  { %v105_v36 = vsel %vm104_vm4, 1.0, %v94_v35 }
  0xa4   :  { %v98_v37 = vpop.permute.xlu0 %97  ;;  %v102_v38 = vpop.permute.xlu1 %101 }
  0xa5   :  { %v107_v39 = vsel %vm106_vm5, %v105_v36, %v98_v37 }
  0xa6   :  { %v109_v40 = vsel %vm108_vm6, %v107_v39, %v102_v38 }
  0xa7   :  { %196 = vmatmul.msk.f32.vlgmr.msra.gmra.mxu0 %vm118_vm7, %v109_v40 }
 0x124   :  { %v139_v41 = vpop.f32.mrf.mxu0 }
 0x125   :  { %142 = vadd.xlane.f32.xlu1 %v139_v41 }
 0x198   :  { %v143_v44 = vpop.xlane.xlu1 %142 }
 0x199   :  { %v144_v45 = vmul.f32 0.03125, %v143_v44 }
 0x19b   :  { %v145_v46 = vsub.f32 %v139_v41, %v144_v45 }
 0x19d   :  { %v149_v47 = vsel %vm148_vm8, %v145_v46, 0.0 }
 0x19e   :  { %v150_v48 = vmul.f32 %v149_v47, %v149_v47 }
 0x1a0   :  { %151 = vadd.xlane.f32.xlu2 %v150_v48 }
 0x213   :  { %v152_v49 = vpop.xlane.xlu2 %151 }
 0x214   :  { %v153_v50 = vmul.f32 0.03125, %v152_v49 }
 0x216   :  { %v154_v51 = vadd.f32 1e-05, %v153_v50 }
 0x218   :  { %211 = vrsqrt.f32 %v154_v51  ;;  %vm161_vm10 = vweird.f32 %v154_v51 }
 0x21e   :  { %v212_v52 = vpop.eup %211 }
 0x21f   :  { %v156_v53 = vmul.f32 %v212_v52, %v154_v51  ;;  %vm162_vm9 = vweird.f32 %v212_v52 }
 0x220   :  { %vm163_vm11 = vmor %vm161_vm10, %vm162_vm9 }
 0x221   :  { %v157_v54 = vmul.f32 %v212_v52, %v156_v53 }
 0x223   :  { %v158_v55 = vmul.f32 0.5, %v157_v54 }
 0x225   :  { %v159_v56 = vsub.f32 1.5, %v158_v55 }
 0x227   :  { %v160_v57 = vmul.f32 %v212_v52, %v159_v56 }
 0x229   :  { %v164_v59 = vsel %vm163_vm11, %v212_v52, %v160_v57 }
 0x22a   :  { %v165_v60 = vmul.f32 %v164_v59, %v145_v46 }
 0x22c   :  { %v170_v62 = vmul.f32 %v205_v58, %v165_v60 }
 0x22e   :  { %v175_v63 = vadd.f32 %v206_v61, %v170_v62 }
 0x230   :  { %176 = vst [vmem:[#allocation8] sm:$0xff] %v175_v63 }
 0x231   :  { %187 = dma.vmem_to_hbm [thread:$0]  %s183_s24, 128, %s185_s27, [#allocation5]  }
 0x232   :  { %289 = dma.done.wait [#allocation5], 128  }
 0x233   :  { %290 = vsyncadd [#allocation5], 4294967168 }
 0x234   :  { %192 = vsyncpa [#allocation4], 1 }
 0x235   :  { %193 = vsyncpa [#allocation7], 1 }
 0x236   :  { %194 = vsyncpa [#allocation5], 1 }

</bundles_post_ra>
